<compile_context>
chip_gen: v7x
topology: tpu7x:2x2x1
jax: 0.10.0
libtpu: 0.0.40
codegen_flags: <defaults>
</compile_context>

<pallas_src>
import functools

import jax
import jax.numpy as jnp
import numpy as np
from jax import lax
from jax.experimental import pallas as pl
from jax.experimental.pallas import tpu as pltpu

ACT_DTYPE = jnp.bfloat16
VMEM_LIMIT = 32 * 1024 * 1024  # raises v5e's 16MiB scoped default; no-op on v6e/v7x


# ----------------------------------------------------------------------------------
# helpers
# ----------------------------------------------------------------------------------
def _round_up(x, m):
    return ((x + m - 1) // m) * m


def _pick_tm(M):
    """(tm, padded_M): full M when small, else a big mult-of-8 divisor, else pad to 512."""
    if M <= 1024:
        return M, M
    for t in range(1024, 255, -8):          # never fall back to tm=128
        if M % t == 0:
            return t, M
    return 512, _round_up(M, 512)


def _pick_tn(N):
    return N if N <= 512 else 512


def _pick_hw_tile(hw):
    for t in (4096, 2048, 1600, 1024, 800, 512, 400, 256, 200, 128, 64, 32, 16, 8):
        if hw % t == 0:
            return t
    return hw


def _pick_th(W):
    """Rows per conv3x3 grid step: smallest multiple of 8 giving MXU M = th*(W+2) >= 512."""
    Wp = W + 2
    return 8 * max(1, -(-512 // (8 * Wp)))


# ----------------------------------------------------------------------------------
# Pallas kernel 1: matmul (1x1 conv) + bias [+ residual] [+ ReLU]
#   BN scale is pre-folded into the weights; K is never tiled (max K = 2048 bf16).
# ----------------------------------------------------------------------------------
def _mm_kernel(x_ref, w_ref, b_ref, o_ref, *, relu):
    acc = jnp.dot(x_ref[...], w_ref[...], preferred_element_type=jnp.float32)
    y = acc + b_ref[...]
    if relu:
        y = jnp.maximum(y, 0.0)
    o_ref[...] = y.astype(o_ref.dtype)


def _mm_res_kernel(x_ref, w_ref, b_ref, r_ref, o_ref, *, relu):
    acc = jnp.dot(x_ref[...], w_ref[...], preferred_element_type=jnp.float32)
    y = acc + b_ref[...] + r_ref[...].astype(jnp.float32)
    if relu:
        y = jnp.maximum(y, 0.0)
    o_ref[...] = y.astype(o_ref.dtype)


@functools.partial(jax.jit, static_argnames=("relu",))
def matmul_bias_act(x, w, bias, *, relu, residual=None):
    """x:(M,K) bf16, w:(K,N) bf16 (BN folded), bias:(1,N) f32 -> (M,N) bf16."""
    M, K = x.shape
    _, N = w.shape
    tm, Mp = _pick_tm(M)
    tn = _pick_tn(N)
    gm, gn = Mp // tm, N // tn
    xp = x if Mp == M else jnp.pad(x, ((0, Mp - M), (0, 0)))
    rp = None
    if residual is not None:
        rp = residual if Mp == M else jnp.pad(residual, ((0, Mp - M), (0, 0)))

    # Grid ordering: keep the operand with the larger re-stream cost resident across the
    # inner sweep (Pallas skips the copy when the block index is unchanged).
    w_restream = gm * K * N          # cost of (m outer, n inner) ordering
    x_restream = gn * Mp * K         # cost of (n outer, m inner) ordering
    if gn == 1 or w_restream <= x_restream:
        grid = (gm, gn)
        xmap = lambda i, j: (i, 0)
        wmap = lambda i, j: (0, j)
        bmap = lambda i, j: (0, j)
        omap = lambda i, j: (i, j)
    else:
        grid = (gn, gm)
        xmap = lambda j, i: (i, 0)
        wmap = lambda j, i: (0, j)
        bmap = lambda j, i: (0, j)
        omap = lambda j, i: (i, j)

    in_specs = [
        pl.BlockSpec((tm, K), xmap),
        pl.BlockSpec((K, tn), wmap),
        pl.BlockSpec((1, tn), bmap),
    ]
    args = [xp, w, bias]
    if rp is not None:
        in_specs.append(pl.BlockSpec((tm, tn), omap))
        args.append(rp)
        kern = functools.partial(_mm_res_kernel, relu=relu)
    else:
        kern = functools.partial(_mm_kernel, relu=relu)

    out = pl.pallas_call(
        kern,
        out_shape=jax.ShapeDtypeStruct((Mp, N), ACT_DTYPE),
        grid_spec=pltpu.PrefetchScalarGridSpec(
            num_scalar_prefetch=0,
            grid=grid,
            in_specs=in_specs,
            out_specs=pl.BlockSpec((tm, tn), omap),
        ),
        compiler_params=pltpu.CompilerParams(
            dimension_semantics=("parallel", "parallel"),
            vmem_limit_bytes=VMEM_LIMIT),
    )(*args)
    return out if Mp == M else out[:M]


# ----------------------------------------------------------------------------------
# Pallas kernel 2: 3x3 stride-1 conv, row-blocked shift-and-accumulate.
#   Layout trick: the zero-padded image (rows Hp, cols Wp=W+2) is flattened to a
#   (rows*Wp, C) matrix; output flat position q = h*Wp + x needs input positions
#   q + di*Wp + dj, so the 9 taps become 9 sublane-shifted windows of one 2-D buffer
#   and each tap is a single large (TH*Wp, C) x (C, Cout) MXU dot.
#   Per grid step we DMA one aligned TH-row block plus a small aligned 8-row halo block
#   and assemble them in a VMEM scratch.  Weights (9,C,Cout) stay resident.
# ----------------------------------------------------------------------------------
def _conv3x3_kernel(xm_ref, xh_ref, w_ref, b_ref, o_ref, xbuf_ref, *, Wp, relu):
    TB = xm_ref.shape[1]
    EB = xh_ref.shape[1]
    xbuf_ref[0:TB, :] = xm_ref[0]
    xbuf_ref[TB:TB + EB, :] = xh_ref[0]
    acc = None
    # TODO(synk): the off=1,2 starts are sublane-misaligned; a pltpu.roll-based variant
    #             could avoid per-tap sublane shifts if the XLU ever becomes the bottleneck.
    for di in range(3):
        for dj in range(3):
            off = di * Wp + dj
            part = jnp.dot(xbuf_ref[off:off + TB, :], w_ref[di * 3 + dj],
                           preferred_element_type=jnp.float32)
            acc = part if acc is None else acc + part
    y = acc + b_ref[...]
    if relu:
        y = jnp.maximum(y, 0.0)
    o_ref[0] = y.astype(o_ref.dtype)


@functools.partial(jax.jit, static_argnames=("relu",))
def conv3x3_s1(x_nhwc, w9, bias, *, relu):
    """x:(N,H,W,C) bf16, w9:(9,C,Cout) bf16 (BN folded), bias:(1,Cout) f32."""
    N, H, W, C = x_nhwc.shape
    Cout = w9.shape[-1]
    Wp = W + 2
    th = _pick_th(W)                    # output rows per grid step (multiple of 8)
    NB = -(-H // th)                    # output row-blocks per image
    rows_total = (NB + 1) * th          # padded rows per image (top pad 1, rest zeros)
    xp = jnp.pad(x_nhwc, ((0, 0), (1, rows_total - H - 1), (1, 1), (0, 0)))
    xflat = xp.reshape(N, rows_total * Wp, C)

    TB = th * Wp                        # main block length (flattened), multiple of 8
    EB = 8 * Wp                         # halo block length (8 padded rows)
    KH = th // 8                        # main-block index -> halo-block index factor

    out = pl.pallas_call(
        functools.partial(_conv3x3_kernel, Wp=Wp, relu=relu),
        out_shape=jax.ShapeDtypeStruct((N, NB * TB, Cout), ACT_DTYPE),
        grid_spec=pltpu.PrefetchScalarGridSpec(
            num_scalar_prefetch=0,
            grid=(N, NB),
            in_specs=[
                pl.BlockSpec((1, TB, C), lambda n, j: (n, j, 0)),
                pl.BlockSpec((1, EB, C), lambda n, j: (n, (j + 1) * KH, 0)),
                pl.BlockSpec((9, C, Cout), lambda n, j: (0, 0, 0)),
                pl.BlockSpec((1, Cout), lambda n, j: (0, 0)),
            ],
            out_specs=pl.BlockSpec((1, TB, Cout), lambda n, j: (n, j, 0)),
            scratch_shapes=[pltpu.VMEM((TB + EB, C), ACT_DTYPE)],
        ),
        compiler_params=pltpu.CompilerParams(
            dimension_semantics=("parallel", "parallel"),
            vmem_limit_bytes=VMEM_LIMIT),
    )(xflat, xflat, w9, bias)
    out = out.reshape(N, NB * th, Wp, Cout)[:, :H, :W, :]
    return out


# ----------------------------------------------------------------------------------
# Pallas kernels 3+4: GroupNorm (32 groups), two-pass, HW-tiled.
#   pass 1: per-image per-channel scale/shift (group stats folded with gamma/beta)
#   pass 2: y = x*scale + shift [+ residual] [+ ReLU]
# ----------------------------------------------------------------------------------
def _gn_stats_kernel(x_ref, gm_ref, gmt_ref, g_ref, b_ref, sc_ref, sh_ref,
                     s1_ref, s2_ref, *, eps, cnt):
    h = pl.program_id(1)

    @pl.when(h == 0)
    def _():
        s1_ref[...] = jnp.zeros_like(s1_ref)
        s2_ref[...] = jnp.zeros_like(s2_ref)

    x = x_ref[0].astype(jnp.float32)                              # (th, C)
    s1_ref[...] += jnp.sum(x, axis=0, keepdims=True)
    s2_ref[...] += jnp.sum(x * x, axis=0, keepdims=True)

    @pl.when(h == pl.num_programs(1) - 1)
    def _():
        sg1 = jnp.dot(s1_ref[...], gm_ref[...], preferred_element_type=jnp.float32)
        sg2 = jnp.dot(s2_ref[...], gm_ref[...], preferred_element_type=jnp.float32)
        mean_g = sg1 / cnt
        var_g = jnp.maximum(sg2 / cnt - mean_g * mean_g, 0.0)     # clamp >= 0
        rstd_g = lax.rsqrt(var_g + eps)
        mean_c = jnp.dot(mean_g, gmt_ref[...], preferred_element_type=jnp.float32)
        rstd_c = jnp.dot(rstd_g, gmt_ref[...], preferred_element_type=jnp.float32)
        scale = rstd_c * g_ref[...]
        sc_ref[0] = scale
        sh_ref[0] = b_ref[...] - mean_c * scale


def _gn_apply_kernel(x_ref, sc_ref, sh_ref, o_ref, *, relu):
    y = x_ref[0].astype(jnp.float32) * sc_ref[0] + sh_ref[0]
    if relu:
        y = jnp.maximum(y, 0.0)
    o_ref[0] = y.astype(o_ref.dtype)


def _gn_apply_res_kernel(x_ref, sc_ref, sh_ref, r_ref, o_ref, *, relu):
    y = x_ref[0].astype(jnp.float32) * sc_ref[0] + sh_ref[0]
    y = y + r_ref[0].astype(jnp.float32)
    if relu:
        y = jnp.maximum(y, 0.0)
    o_ref[0] = y.astype(o_ref.dtype)


@functools.partial(jax.jit, static_argnames=("num_groups", "eps", "relu"))
def group_norm(x_nhwc, gamma, beta, *, num_groups=32, eps=1e-5, relu=False,
               residual=None):
    n, h, w, c = x_nhwc.shape
    hw = h * w
    th = _pick_hw_tile(hw)
    cg = c // num_groups
    x2 = x_nhwc.reshape(n, hw, c)
    gm_np = (np.arange(c)[:, None] // cg
             == np.arange(num_groups)[None, :]).astype(np.float32)    # (C, G)
    gmat = jnp.asarray(gm_np)
    gmat_t = jnp.asarray(np.ascontiguousarray(gm_np.T))
    g2 = gamma.reshape(1, c).astype(jnp.float32)
    b2 = beta.reshape(1, c).astype(jnp.float32)

    # NOTE: hw axis must stay "arbitrary" — scale/shift are finalized on its last step.
    scale, shift = pl.pallas_call(
        functools.partial(_gn_stats_kernel, eps=eps, cnt=float(hw * cg)),
        out_shape=(jax.ShapeDtypeStruct((n, 1, c), jnp.float32),
                   jax.ShapeDtypeStruct((n, 1, c), jnp.float32)),
        grid_spec=pltpu.PrefetchScalarGridSpec(
            num_scalar_prefetch=0,
            grid=(n, hw // th),
            in_specs=[
                pl.BlockSpec((1, th, c), lambda i, j: (i, j, 0)),
                pl.BlockSpec((c, num_groups), lambda i, j: (0, 0)),
                pl.BlockSpec((num_groups, c), lambda i, j: (0, 0)),
                pl.BlockSpec((1, c), lambda i, j: (0, 0)),
                pl.BlockSpec((1, c), lambda i, j: (0, 0)),
            ],
            out_specs=[pl.BlockSpec((1, 1, c), lambda i, j: (i, 0, 0)),
                       pl.BlockSpec((1, 1, c), lambda i, j: (i, 0, 0))],
            scratch_shapes=[pltpu.VMEM((1, c), jnp.float32),
                            pltpu.VMEM((1, c), jnp.float32)],
        ),
        compiler_params=pltpu.CompilerParams(
            dimension_semantics=("parallel", "arbitrary")),
    )(x2, gmat, gmat_t, g2, b2)

    in_specs = [
        pl.BlockSpec((1, th, c), lambda i, j: (i, j, 0)),
        pl.BlockSpec((1, 1, c), lambda i, j: (i, 0, 0)),
        pl.BlockSpec((1, 1, c), lambda i, j: (i, 0, 0)),
    ]
    args = [x2, scale, shift]
    if residual is not None:
        in_specs.append(pl.BlockSpec((1, th, c), lambda i, j: (i, j, 0)))
        args.append(residual.reshape(n, hw, c))
        kern = functools.partial(_gn_apply_res_kernel, relu=relu)
    else:
        kern = functools.partial(_gn_apply_kernel, relu=relu)
    out = pl.pallas_call(
        kern,
        out_shape=jax.ShapeDtypeStruct((n, hw, c), ACT_DTYPE),
        grid_spec=pltpu.PrefetchScalarGridSpec(
            num_scalar_prefetch=0,
            grid=(n, hw // th),
            in_specs=in_specs,
            out_specs=pl.BlockSpec((1, th, c), lambda i, j: (i, j, 0)),
        ),
        compiler_params=pltpu.CompilerParams(
            dimension_semantics=("parallel", "parallel")),
    )(*args)
    return out.reshape(n, h, w, c)


# ----------------------------------------------------------------------------------
# conv wrappers / small XLA helpers
# ----------------------------------------------------------------------------------
def conv1x1(x_nhwc, w, bias, *, relu, residual=None):
    n, h, w_, c = x_nhwc.shape
    cout = w.shape[1]
    x2 = x_nhwc.reshape(n * h * w_, c)
    r2 = None if residual is None else residual.reshape(n * h * w_, cout)
    y = matmul_bias_act(x2, w, bias, relu=relu, residual=r2)
    return y.reshape(n, h, w_, cout)


def stem_forward(x, p):
    # TODO(synk): 7x7 stride-2 stem conv runs via XLA's conv emitter (C_in=3 makes a
    #             Pallas MXU formulation inefficient without im2col HBM blowup).
    y = lax.conv_general_dilated(
        x, p["w"], window_strides=(2, 2), padding=((3, 3), (3, 3)),
        dimension_numbers=("NHWC", "HWIO", "NHWC"),
        preferred_element_type=jnp.float32)
    y = jnp.maximum(y + p["b"].reshape(1, 1, 1, -1), 0.0)
    return y.astype(ACT_DTYPE)


def maxpool_3x3_s2(x):
    n, h, w, c = x.shape
    xp = jnp.pad(x, ((0, 0), (1, 1), (1, 1), (0, 0)), constant_values=-np.inf)
    ho = (h + 2 - 3) // 2 + 1
    wo = (w + 2 - 3) // 2 + 1
    out = None
    for i in range(3):
        for j in range(3):
            sl = xp[:, i:i + 2 * (ho - 1) + 1:2, j:j + 2 * (wo - 1) + 1:2, :]
            out = sl if out is None else jnp.maximum(out, sl)
    return out


def up2(x):
    # TODO(synk): still materialized in HBM; could be folded into the GN-apply kernel.
    return jnp.repeat(jnp.repeat(x, 2, axis=1), 2, axis=2)


# ----------------------------------------------------------------------------------
# deterministic parameter construction (FrozenBN scale folded into weights once)
# ----------------------------------------------------------------------------------
STAGES = [  # name, num_blocks, in_ch, bottleneck_ch, out_ch, first_stride
    ("res2", 3, 64, 64, 256, 1),
    ("res3", 4, 256, 128, 512, 2),
    ("res4", 6, 512, 256, 1024, 2),
    ("res5", 3, 1024, 512, 2048, 2),
]


def _he(key, kh, kw, cin, cout):
    fan_in = kh * kw * cin
    return jax.random.normal(key, (kh, kw, cin, cout), jnp.float32) * np.sqrt(2.0 / fan_in)


def _frozen_bn(key, cout):
    ks, kb = jax.random.split(key)
    scale = 1.0 + 0.1 * jax.random.normal(ks, (cout,), jnp.float32)
    bias = 0.1 * jax.random.normal(kb, (cout,), jnp.float32)
    return scale, bias


def _conv_bn_p(key, kh, kw, cin, cout):
    kw_key, kbn = jax.random.split(key)
    w = _he(kw_key, kh, kw, cin, cout)
    scale, bias = _frozen_bn(kbn, cout)        # FrozenBN: y = x*scale + bias
    wf = (w * scale).astype(ACT_DTYPE)         # fold scale into weights (build time)
    if kh == 1 and kw == 1:
        wf = wf.reshape(cin, cout)
    else:
        wf = wf.reshape(kh * kw, cin, cout)
    return dict(w=wf, b=bias.reshape(1, cout))


def _stem_p(key, cout=64):
    kw_key, kbn = jax.random.split(key)
    w = _he(kw_key, 7, 7, 3, cout)
    scale, bias = _frozen_bn(kbn, cout)
    wf = (w * scale).astype(ACT_DTYPE)         # (7,7,3,64), HWIO
    return dict(w=wf, b=bias.reshape(1, cout))


def build_params(key):
    keys = iter(jax.random.split(key, 512))
    resnet = {"stem": _stem_p(next(keys))}
    for name, nblocks, cin, cb, cout, _ in STAGES:
        blocks = []
        for bi in range(nblocks):
            in_ch = cin if bi == 0 else cout
            blk = dict(conv1=_conv_bn_p(next(keys), 1, 1, in_ch, cb),
                       conv2=_conv_bn_p(next(keys), 3, 3, cb, cb),
                       conv3=_conv_bn_p(next(keys), 1, 1, cb, cout))
            if bi == 0:
                blk["shortcut"] = _conv_bn_p(next(keys), 1, 1, in_ch, cout)
            blocks.append(blk)
        resnet[name] = blocks

    cd = 256

    def _gn_affine(k):
        k1, k2 = jax.random.split(k)
        g = (1.0 + 0.1 * jax.random.normal(k1, (1, cd), jnp.float32))
        b = 0.1 * jax.random.normal(k2, (1, cd), jnp.float32)
        return g, b

    fpn = {}
    for name, cin in (("res3", 512), ("res4", 1024), ("res5", 2048)):
        kw_, kb_, kg_ = jax.random.split(next(keys), 3)
        g, b = _gn_affine(kg_)
        fpn[f"proj_{name}"] = dict(
            w=_he(kw_, 1, 1, cin, cd).reshape(cin, cd).astype(ACT_DTYPE),
            b=0.01 * jax.random.normal(kb_, (1, cd), jnp.float32),
            gn_g=g, gn_b=b)
    kw_, kg_ = jax.random.split(next(keys))
    g, b = _gn_affine(kg_)
    fpn["lateral_res2"] = dict(
        w=_he(kw_, 1, 1, 256, cd).reshape(256, cd).astype(ACT_DTYPE),
        b=jnp.zeros((1, cd), jnp.float32), gn_g=g, gn_b=b)
    for lvl in ("p2", "p3", "p4", "p5"):
        kw_, kg_ = jax.random.split(next(keys))
        g, b = _gn_affine(kg_)
        fpn[f"out_{lvl}"] = dict(
            w=_he(kw_, 3, 3, cd, cd).reshape(9, cd, cd).astype(ACT_DTYPE),
            b=jnp.zeros((1, cd), jnp.float32), gn_g=g, gn_b=b)
    kw_, kb_ = jax.random.split(next(keys))
    fpn["mask"] = dict(
        w=_he(kw_, 3, 3, cd, cd).reshape(9, cd, cd).astype(ACT_DTYPE),
        b=0.01 * jax.random.normal(kb_, (1, cd), jnp.float32))
    return {"resnet": resnet, "fpn": fpn}


# ----------------------------------------------------------------------------------
# forward pass
# ----------------------------------------------------------------------------------
def resnet50_forward(x_nhwc, params):
    x = stem_forward(x_nhwc, params["stem"])
    x = maxpool_3x3_s2(x)
    feats = {}
    for name, _, _, _, _, first_stride in STAGES:
        for bi, blk in enumerate(params[name]):
            s = first_stride if bi == 0 else 1
            # TODO(synk): the stride-2 subsample could be folded into the matmul BlockSpec;
            #             it is at least computed once and shared by conv1 and the shortcut.
            x_in = x if s == 1 else x[:, ::s, ::s, :]
            if "shortcut" in blk:
                sc = conv1x1(x_in, blk["shortcut"]["w"], blk["shortcut"]["b"], relu=False)
            else:
                sc = x
            h = conv1x1(x_in, blk["conv1"]["w"], blk["conv1"]["b"], relu=True)  # stride_in_1x1
            h = conv3x3_s1(h, blk["conv2"]["w"], blk["conv2"]["b"], relu=True)
            x = conv1x1(h, blk["conv3"]["w"], blk["conv3"]["b"],
                        relu=True, residual=sc)                  # BN + add + ReLU fused
        feats[name] = x
    return feats


def temporal_neck_forward(feats, p):
    # TODO(synk): MSDeformAttn transformer encoder (6 layers) + temporal attention skipped.
    def proj(name, x):
        q = p[name]
        return conv1x1(x, q["w"], q["b"], relu=False), q

    c5_pre, q5 = proj("proj_res5", feats["res5"])
    t5 = group_norm(c5_pre, q5["gn_g"], q5["gn_b"])

    c4_pre, q4 = proj("proj_res4", feats["res4"])
    t4 = group_norm(c4_pre, q4["gn_g"], q4["gn_b"], residual=up2(t5))

    c3_pre, q3 = proj("proj_res3", feats["res3"])
    t3 = group_norm(c3_pre, q3["gn_g"], q3["gn_b"], residual=up2(t4))

    ql = p["lateral_res2"]
    c2_pre = conv1x1(feats["res2"], ql["w"], ql["b"], relu=False)
    t2 = group_norm(c2_pre, ql["gn_g"], ql["gn_b"], residual=up2(t3))

    outs = []
    # TODO(synk): the four 3x3 FPN output convs could be batched into one pallas_call.
    for lvl, t in (("p2", t2), ("p3", t3), ("p4", t4), ("p5", t5)):
        q = p[f"out_{lvl}"]
        y = conv3x3_s1(t, q["w"], q["b"], relu=False)
        y = group_norm(y, q["gn_g"], q["gn_b"], relu=True)
        outs.append(y)

    q = p["mask"]
    mask_feat = conv3x3_s1(outs[0], q["w"], q["b"], relu=False)
    return [mask_feat, outs[1], outs[2], outs[3]]   # strides 4, 8, 16, 32


@jax.jit
def _backbone_impl(images, params):
    B, T, C, H, W = images.shape
    x = images.reshape(B * T, C, H, W).transpose(0, 2, 3, 1).astype(ACT_DTYPE)  # NHWC
    feats = resnet50_forward(x, params["resnet"])
    neck = temporal_neck_forward(feats, params["fpn"])
    outs = []
    for f in neck:                                                  # back to B T C H W
        n, h, w, c = f.shape
        outs.append(f.astype(jnp.float32).transpose(0, 3, 1, 2).reshape(B, T, c, h, w))
    return outs


def backbone_forward(images, params):
    """images: (B, T, 3, H, W) float32 — mirrors Backbone.forward."""
    assert images.ndim == 5, f"images: {images.shape}"
    outs = _backbone_impl(images, params)
    return {"backbone_features": None, "output_features": outs}


# ----------------------------------------------------------------------------------
if __name__ == "__main__":
    key = jax.random.PRNGKey(0)
    kp, kx = jax.random.split(key)
    params = build_params(kp)
    # small but module-consistent input: batch=1, clip_len=2, 3 channels, 32x32 images
    images = jax.random.uniform(kx, (1, 2, 3, 32, 32), jnp.float32) * 255.0
    out = backbone_forward(images, params)
    jax.block_until_ready(out["output_features"])
    expected = [(1, 2, 256, 8, 8), (1, 2, 256, 4, 4), (1, 2, 256, 2, 2), (1, 2, 256, 1, 1)]
    assert [tuple(f.shape) for f in out["output_features"]] == expected
    assert all(bool(jnp.all(jnp.isfinite(f))) for f in out["output_features"])
    print("KERNEL_OK")
</pallas_src>

<mosaic_0001>
module attributes {stable_mosaic.version = 11 : i64} {
  func.func @_mm_kernel(%arg0: i32, %arg1: i32, %arg2: memref<128x64xbf16, #tpu.memory_space<vmem>>, %arg3: memref<64x256xbf16, #tpu.memory_space<vmem>>, %arg4: memref<1x256xf32, #tpu.memory_space<vmem>>, %arg5: memref<128x256xbf16, #tpu.memory_space<vmem>>) attributes {dimension_semantics = [#tpu.dimension_semantics<parallel>, #tpu.dimension_semantics<parallel>], iteration_bounds = array<i64: 1, 1>, scalar_prefetch = 0 : i64, scratch_operands = 0 : i64, tpu.core_type = #tpu.core_type<tc>, window_params = [{transform_indices = @transform_0, window_bounds = array<i64: 128, 64>}, {transform_indices = @transform_1, window_bounds = array<i64: 64, 256>}, {transform_indices = @transform_2, window_bounds = array<i64: 1, 256>}, {transform_indices = @transform_3, window_bounds = array<i64: 128, 256>}]} {
    %c0 = arith.constant 0 : index
    %c0_0 = arith.constant 0 : index
    %0 = vector.load %arg2[%c0, %c0_0] : memref<128x64xbf16, #tpu.memory_space<vmem>>, vector<128x64xbf16>
    %c0_1 = arith.constant 0 : index
    %c0_2 = arith.constant 0 : index
    %1 = vector.load %arg3[%c0_1, %c0_2] : memref<64x256xbf16, #tpu.memory_space<vmem>>, vector<64x256xbf16>
    %cst = arith.constant dense<0.000000e+00> : vector<128x256xf32>
    %2 = tpu.matmul %0, %1, %cst {dimension_numbers = #tpu.dot_dimension_numbers<[1], [0], [0], [1], [0, 0, 1, 1], [], []>} : vector<128x64xbf16>, vector<64x256xbf16>, vector<128x256xf32> -> vector<128x256xf32>
    %c0_3 = arith.constant 0 : index
    %c0_4 = arith.constant 0 : index
    %3 = vector.load %arg4[%c0_3, %c0_4] : memref<1x256xf32, #tpu.memory_space<vmem>>, vector<1x256xf32>
    %4 = vector.broadcast %3 : vector<1x256xf32> to vector<128x256xf32>
    %5 = arith.addf %2, %4 : vector<128x256xf32>
    %6 = arith.truncf %5 : vector<128x256xf32> to vector<128x256xbf16>
    %c0_5 = arith.constant 0 : index
    %c0_6 = arith.constant 0 : index
    %7 = vector.load %arg5[%c0_5, %c0_6] : memref<128x256xbf16, #tpu.memory_space<vmem>>, vector<128x256xbf16>
    tpu.vector_store %arg5[%c0_5, %c0_6], %6 {strides = array<i32>} : memref<128x256xbf16, #tpu.memory_space<vmem>>, vector<128x256xbf16>,
    return
  }
  func.func @transform_0(%arg0: i32, %arg1: i32) -> (i32, i32) {
    %c0_i32 = arith.constant 0 : i32
    %c0_i32_0 = arith.constant 0 : i32
    return %arg0, %c0_i32 : i32, i32
  }
  func.func @transform_1(%arg0: i32, %arg1: i32) -> (i32, i32) {
    %c0_i32 = arith.constant 0 : i32
    %c0_i32_0 = arith.constant 0 : i32
    return %c0_i32, %arg1 : i32, i32
  }
  func.func @transform_2(%arg0: i32, %arg1: i32) -> (i32, i32) {
    %c0_i32 = arith.constant 0 : i32
    %c0_i32_0 = arith.constant 0 : i32
    return %c0_i32, %arg1 : i32, i32
  }
  func.func @transform_3(%arg0: i32, %arg1: i32) -> (i32, i32) {
    %c0_i32 = arith.constant 0 : i32
    return %arg0, %arg1 : i32, i32
  }
}

</mosaic_0001>

<bundles_post_ra>
// kernel: matmul_bias_act.1
= control target key start
LH: loop header
LB: loop body
LE: loop exit
PB: predicated region body
PF: predicated region fallthrough
CT: control target
= control target key end

     0   :  { %v510_v2 = vmov 0   ;;  %s641_s0 = inlined_call_operand.vmem [shape: bf16[128,64], index: 0, kind: input, shape index: {}]   ;;  %s642_s1 = inlined_call_operand.vmem [shape: bf16[64,256], index: 1, kind: input, shape index: {}]   ;;  %s643_s2 = inlined_call_operand.vmem [shape: f32[1,256], index: 2, kind: input, shape index: {}]   ;;  %s644_s3 = inlined_call_operand.hbm [shape: bf16[128,256], index: 3, kind: output, shape index: {}]  }
   0x1   :  { %v466_v0 = vld [vmem:[%s642_s1 + $0x4] ss:$8 sps:$4 sm:$0xff]   ;;  %v468_v1 = vld [vmem:[%s642_s1] ss:$8 sps:$4 sm:$0xff]   ;;  %189 = vmatprep.mubr.bf16.mxu0 %v510_v2  ;;  %229 = vmatprep.mubr.bf16.mxu1 %v510_v2  ;;  %v469_v3 = vld [vmem:[%s642_s1 + $0x14] ss:$8 sps:$4 sm:$0xff]  }
   0x2   :  { %157 = vmatprep.subr.bf16.mxu0 %v466_v0  ;;  %454 = vmatprep.subr.bf16.mxu1 %v466_v0  ;;  %v471_v4 = vld [vmem:[%s642_s1 + $0x10] ss:$8 sps:$4 sm:$0xff]   ;;  %v472_v5 = vld [vmem:[%s642_s1 + $0x24] ss:$8 sps:$4 sm:$0xff]   ;;  %v474_v6 = vld [vmem:[%s642_s1 + $0x20] ss:$8 sps:$4 sm:$0xff]  }
   0x3   :  { %158 = vmatpush1.bf16.msra.mxu0 %v468_v1  ;;  %458 = vmatpush1.bf16.msra.mxu1 %v468_v1  ;;  %v475_v7 = vld [vmem:[%s642_s1 + $0x34] ss:$8 sps:$4 sm:$0xff]   ;;  %v477_v8 = vld [vmem:[%s642_s1 + $0x30] ss:$8 sps:$4 sm:$0xff]  }
   0x4   :  { %159 = vmatprep.subr.bf16.mxu0 %v469_v3  ;;  %455 = vmatprep.subr.bf16.mxu1 %v469_v3 }
   0x7   :  { %160 = vmatpush1.bf16.msra.mxu0 %v471_v4  ;;  %459 = vmatpush1.bf16.msra.mxu1 %v471_v4 }
   0x8   :  { %161 = vmatprep.subr.bf16.mxu0 %v472_v5  ;;  %456 = vmatprep.subr.bf16.mxu1 %v472_v5 }
   0xb   :  { %162 = vmatpush1.bf16.msra.mxu0 %v474_v6  ;;  %460 = vmatpush1.bf16.msra.mxu1 %v474_v6 }
   0xc   :  { %163 = vmatprep.subr.bf16.mxu0 %v475_v7  ;;  %457 = vmatprep.subr.bf16.mxu1 %v475_v7 }
   0xd   :  { %8 = vsyncpa [#allocation3], 0  ;;  %v478_v9 = vld [vmem:[%s641_s0] sm:$0xff]   ;;  %vm132_vm0 = vcmask 523264   ;;  %v480_v11 = vld [vmem:[%s641_s0 + $0x8] sm:$0xff]   ;;  %v42_v17 = vlaneseq }
   0xe   :  { %v479_v10 = vld [vmem:[%s641_s0 + $0x20] sm:$0xff]   ;;  %v481_v12 = vld [vmem:[%s641_s0 + $0x28] sm:$0xff]   ;;  %v482_v13 = vld [vmem:[%s641_s0 + $0x10] sm:$0xff]  }
   0xf   :  { %164 = vmatpush1.bf16.msra.mxu0 %v477_v8  ;;  %461 = vmatpush1.bf16.msra.mxu1 %v477_v8  ;;  %v483_v14 = vld [vmem:[%s641_s0 + $0x30] sm:$0xff]   ;;  %v484_v15 = vld [vmem:[%s641_s0 + $0x18] sm:$0xff]   ;;  %v43_v18 = vshrl.u32 %v42_v17, 7  ;;  %v40_v20 = vld [vmem:[%s643_s2] sm:$0x3] }
  0x10   :  { %v485_v16 = vld [vmem:[%s641_s0 + $0x38] sm:$0xff]   ;;  %s511_s0 = smov [#allocation2]  }
  0x11   :  { %v44_v19 = vsub.s32 0, %v43_v18  ;;  %v48_v21 = vsub.s32 1, %v43_v18  ;;  %s387_s2 = sshll.u32 %s511_s0, 4  ;;  %s388_s2 = int_to_ptr.vmem [resolvable:$true] %s387_s2 }
  0x12   :  { %414 = vmatmul.mubr.msk.bf16.vlgmr.msra.gmra.mrb[0].mxu0 %vm132_vm0, %v478_v9  ;;  %418 = vmatmul.mubr.msk.bf16.vlgmr.msra.gmra.mrb[0].mxu1 %vm132_vm0, %v479_v10  ;;  %s486_s18 = scalar_lea.vmem %s388_s2, 2048  ;;  %p491_p1 = scmp.lt.s32.totalorder %s388_s2, %s388_s2 }
  0x13   :  { %199 = vmatprep.mubr.bf16.mxu0 %v510_v2  ;;  %239 = vmatprep.mubr.bf16.mxu1 %v510_v2  ;;  %v593_v22 = vrot.slane %v40_v20, %v44_v19  ;;  %v595_v23 = vrot.slane %v40_v20, %v48_v21  ;;  %p487_p0 = scmp.ne.s32.totalorder %s388_s2, %s486_s18  ;;  %p492_p2 = scmp.lt.s32.totalorder %s486_s18, %s486_s18 }
  0x15   :  { %p493_p3 = por %p492_p2, %p491_p1 }
  0x17   :  { %p494_p4 = pnand %p493_p3, %p487_p0 }
  0x1a   :  { %415 = vmatmul.mubr.msk.bf16.gmra.mrb[4].mxu0 %vm132_vm0, %v480_v11  ;;  %419 = vmatmul.mubr.msk.bf16.gmra.mrb[4].mxu1 %vm132_vm0, %v481_v12 }
  0x1b   :  { %209 = vmatprep.mubr.bf16.mxu0 %v510_v2  ;;  %249 = vmatprep.mubr.bf16.mxu1 %v510_v2 }
  0x22   :  { %416 = vmatmul.mubr.msk.bf16.gmra.mrb[8].mxu0 %vm132_vm0, %v482_v13  ;;  %420 = vmatmul.mubr.msk.bf16.gmra.mrb[8].mxu1 %vm132_vm0, %v483_v14 }
  0x23   :  { %219 = vmatprep.mubr.bf16.mxu0 %v510_v2  ;;  %259 = vmatprep.mubr.bf16.mxu1 %v510_v2 }
  0x2a   :  { %417 = vmatmul.mubr.msk.bf16.gmra.mrb[12].mxu0 %vm132_vm0, %v484_v15  ;;  %421 = vmatmul.mubr.msk.bf16.gmra.mrb[12].mxu1 %vm132_vm0, %v485_v16 }
  0xe5   :  { %v191_v24 = vpop.f32.mrb[0].mxu0  ;;  %v231_v25 = vpop.f32.mrb[0].mxu1 }
  0xe6   :  { %v192_v26 = vadd.f32 %v191_v24, %v593_v22  ;;  %v232_v27 = vadd.f32 %v231_v25, %v593_v22  ;;  %v193_v28 = vpop.f32.mrb[1].mxu0  ;;  %v233_v29 = vpop.f32.mrb[1].mxu1 }
  0xe7   :  { %v194_v30 = vadd.f32 %v193_v28, %v595_v23  ;;  %v234_v31 = vadd.f32 %v233_v29, %v595_v23  ;;  %v195_v32 = vpop.f32.mrb[2].mxu0  ;;  %v235_v33 = vpop.f32.mrb[2].mxu1 }
  0xe8   :  { %v196_v34 = vadd.f32 %v195_v32, %v593_v22  ;;  %v236_v35 = vadd.f32 %v235_v33, %v593_v22  ;;  %v197_v36 = vpop.f32.mrb[3].mxu0  ;;  %v237_v37 = vpop.f32.mrb[3].mxu1 }
  0xe9   :  { %v438_v38 = vpack.c.bf16 %v194_v30, %v192_v26  ;;  %v446_v39 = vpack.c.bf16 %v234_v31, %v232_v27  ;;  %v198_v40 = vadd.f32 %v197_v36, %v595_v23  ;;  %v238_v41 = vadd.f32 %v237_v37, %v595_v23 }
  0xeb   :  { %366 = vst [vmem:[#allocation2] sm:$0xff] %v438_v38  ;;  %374 = vst [vmem:[#allocation2 + $0x40] sm:$0xff] %v446_v39  ;;  %v439_v42 = vpack.c.bf16 %v198_v40, %v196_v34  ;;  %v447_v43 = vpack.c.bf16 %v238_v41, %v236_v35 }
  0xed   :  { %367 = vst [vmem:[#allocation2 + $0x8] sm:$0xff] %v439_v42  ;;  %375 = vst [vmem:[#allocation2 + $0x48] sm:$0xff] %v447_v43  ;;  %v201_v44 = vpop.f32.mrb[4].mxu0  ;;  %v241_v45 = vpop.f32.mrb[4].mxu1 }
  0xee   :  { %v202_v46 = vadd.f32 %v201_v44, %v593_v22  ;;  %v242_v47 = vadd.f32 %v241_v45, %v593_v22  ;;  %v203_v48 = vpop.f32.mrb[5].mxu0  ;;  %v243_v49 = vpop.f32.mrb[5].mxu1 }
  0xef   :  { %v204_v50 = vadd.f32 %v203_v48, %v595_v23  ;;  %v244_v51 = vadd.f32 %v243_v49, %v595_v23  ;;  %v205_v52 = vpop.f32.mrb[6].mxu0  ;;  %v245_v53 = vpop.f32.mrb[6].mxu1 }
  0xf0   :  { %v206_v54 = vadd.f32 %v205_v52, %v593_v22  ;;  %v246_v55 = vadd.f32 %v245_v53, %v593_v22  ;;  %v207_v56 = vpop.f32.mrb[7].mxu0  ;;  %v247_v57 = vpop.f32.mrb[7].mxu1 }
  0xf1   :  { %v440_v58 = vpack.c.bf16 %v204_v50, %v202_v46  ;;  %v448_v59 = vpack.c.bf16 %v244_v51, %v242_v47  ;;  %v208_v60 = vadd.f32 %v207_v56, %v595_v23  ;;  %v248_v61 = vadd.f32 %v247_v57, %v595_v23 }
  0xf3   :  { %368 = vst [vmem:[#allocation2 + $0x10] sm:$0xff] %v440_v58  ;;  %376 = vst [vmem:[#allocation2 + $0x50] sm:$0xff] %v448_v59  ;;  %v441_v62 = vpack.c.bf16 %v208_v60, %v206_v54  ;;  %v449_v63 = vpack.c.bf16 %v248_v61, %v246_v55 }
  0xf5   :  { %369 = vst [vmem:[#allocation2 + $0x18] sm:$0xff] %v441_v62  ;;  %377 = vst [vmem:[#allocation2 + $0x58] sm:$0xff] %v449_v63  ;;  %v211_v0 = vpop.f32.mrb[8].mxu0  ;;  %v251_v1 = vpop.f32.mrb[8].mxu1 }
  0xf6   :  { %v212_v2 = vadd.f32 %v211_v0, %v593_v22  ;;  %v252_v3 = vadd.f32 %v251_v1, %v593_v22  ;;  %v213_v4 = vpop.f32.mrb[9].mxu0  ;;  %v253_v5 = vpop.f32.mrb[9].mxu1 }
  0xf7   :  { %v214_v6 = vadd.f32 %v213_v4, %v595_v23  ;;  %v254_v7 = vadd.f32 %v253_v5, %v595_v23  ;;  %v215_v8 = vpop.f32.mrb[10].mxu0  ;;  %v255_v9 = vpop.f32.mrb[10].mxu1 }
  0xf8   :  { %v216_v10 = vadd.f32 %v215_v8, %v593_v22  ;;  %v256_v11 = vadd.f32 %v255_v9, %v593_v22  ;;  %v217_v12 = vpop.f32.mrb[11].mxu0  ;;  %v257_v13 = vpop.f32.mrb[11].mxu1 }
  0xf9   :  { %v442_v14 = vpack.c.bf16 %v214_v6, %v212_v2  ;;  %v450_v15 = vpack.c.bf16 %v254_v7, %v252_v3  ;;  %v218_v16 = vadd.f32 %v217_v12, %v595_v23  ;;  %v258_v17 = vadd.f32 %v257_v13, %v595_v23 }
  0xfb   :  { %370 = vst [vmem:[#allocation2 + $0x20] sm:$0xff] %v442_v14  ;;  %378 = vst [vmem:[#allocation2 + $0x60] sm:$0xff] %v450_v15  ;;  %v443_v18 = vpack.c.bf16 %v218_v16, %v216_v10  ;;  %v451_v19 = vpack.c.bf16 %v258_v17, %v256_v11 }
  0xfd   :  { %371 = vst [vmem:[#allocation2 + $0x28] sm:$0xff] %v443_v18  ;;  %379 = vst [vmem:[#allocation2 + $0x68] sm:$0xff] %v451_v19  ;;  %v221_v20 = vpop.f32.mrb[12].mxu0  ;;  %v261_v21 = vpop.f32.mrb[12].mxu1 }
  0xfe   :  { %v222_v24 = vadd.f32 %v221_v20, %v593_v22  ;;  %v262_v25 = vadd.f32 %v261_v21, %v593_v22  ;;  %v223_v26 = vpop.f32.mrb[13].mxu0  ;;  %v263_v27 = vpop.f32.mrb[13].mxu1 }
  0xff   :  { %v224_v28 = vadd.f32 %v223_v26, %v595_v23  ;;  %v264_v29 = vadd.f32 %v263_v27, %v595_v23  ;;  %v225_v30 = vpop.f32.mrb[14].mxu0  ;;  %v265_v31 = vpop.f32.mrb[14].mxu1 }
 0x100   :  { %v226_v32 = vadd.f32 %v225_v30, %v593_v22  ;;  %v266_v33 = vadd.f32 %v265_v31, %v593_v22  ;;  %v227_v34 = vpop.f32.mrb[15].mxu0  ;;  %v267_v35 = vpop.f32.mrb[15].mxu1 }
 0x101   :  { %v444_v36 = vpack.c.bf16 %v224_v28, %v222_v24  ;;  %v452_v37 = vpack.c.bf16 %v264_v29, %v262_v25  ;;  %v228_v38 = vadd.f32 %v227_v34, %v595_v23  ;;  %v268_v39 = vadd.f32 %v267_v35, %v595_v23 }
 0x103   :  { %372 = vst [vmem:[#allocation2 + $0x30] sm:$0xff] %v444_v36  ;;  %380 = vst [vmem:[#allocation2 + $0x70] sm:$0xff] %v452_v37  ;;  %v445_v40 = vpack.c.bf16 %v228_v38, %v226_v32  ;;  %v453_v41 = vpack.c.bf16 %v268_v39, %v266_v33 }
 0x105   :  { %373 = vst [vmem:[#allocation2 + $0x38] sm:$0xff] %v445_v40  ;;  %381 = vst [vmem:[#allocation2 + $0x78] sm:$0xff] %v453_v41 }
 0x106   :  { %497 = shalt.err (!%p494_p4)
}
 0x107   :  { %s498_s21 = scalar_lea.hbm %s644_s3, 2048 }
 0x108   :  { %p499_p5 = scmp.ne.s32.totalorder %s644_s3, %s498_s21  ;;  %p502_p6 = scmp.lt.u32.totalorder %s498_s21, %s644_s3 }
 0x10a   :  { %p504_p7 = pnand %p502_p6, %p499_p5 }
 0x10c   :  { %507 = shalt.err (!%p504_p7)
}
 0x10d   :  { %s512_s26 = smov 128   ;;  %s513_s27 = smov 8  }
 0x10e   :  { %393 = dma.vmem_to_hbm [thread:$0]  %s388_s2, 2048, %s644_s3, [#allocation3], %s512_s26, %s512_s26, %s513_s27  }
 0x10f   :  { %508 = dma.done.wait [#allocation3], 2048  }
 0x110   :  { %509 = vsyncadd [#allocation3], 4294965248 }
 0x111   :  { %397 = vsyncpa [#allocation3], 1 }

</bundles_post_ra>
